<compile_context>
chip_gen: v5e
topology: v5e:2x2
jax: 0.10.0
libtpu: 0.0.40
codegen_flags: <defaults>
</compile_context>

<pallas_src>
import functools
import math

import jax
import jax.numpy as jnp
from jax.experimental import pallas as pl
from jax.experimental.pallas import tpu as pltpu


def attn_kernel(h_ref, e_ref, wh_t_ref, we_t_ref, b_ref, v_ref, o_ref,
                *, out_bt_lanes):
    # h_ref:    (1, Bt, H)   decoder hidden for this batch block (f32, native layout)
    # e_ref:    (T, Bt, H)   encoder outputs for this batch block (bf16, native layout)
    # wh_t_ref: (H, H)       = weight[:, :H].T  (bf16, acts on hidden half of cat)
    # we_t_ref: (H, H)       = weight[:, H:].T  (bf16, acts on encoder half of cat)
    # b_ref:    (1, H)       linear bias (f32)
    # v_ref:    (1, H)       scoring vector v (f32)
    # o_ref:    (Bt, T) or (T, Bt)  softmax(attention energies) over T (f32)
    T, Bt, H = e_ref.shape

    h16 = h_ref[0].astype(jnp.bfloat16)                 # (Bt, H)
    e16 = e_ref[...].reshape(T * Bt, H)                 # free re-view (Bt % 16 == 0)

    # Split concat-linear -> two bf16 MXU matmuls with f32 accumulation.
    proj_h = jnp.dot(h16, wh_t_ref[...], preferred_element_type=jnp.float32)   # (Bt, H)
    proj_e = jnp.dot(e16, we_t_ref[...], preferred_element_type=jnp.float32)   # (T*Bt, H)

    ph = proj_h + b_ref[...]                                                   # (Bt, H) f32
    energy = jnp.tanh(proj_e.reshape(T, Bt, H) + ph[None])                     # (T, Bt, H) f32

    # scores[t, b] = sum_h v[h] * energy[t, b, h]  -- lane reduction, no energy^T.
    scores_tb = jnp.sum(energy * v_ref[...][None], axis=-1)                    # (T, Bt) f32

    if out_bt_lanes:
        # Lane-dense output: softmax over T (sublane axis), store (T, Bt).
        m = jnp.max(scores_tb, axis=0, keepdims=True)                          # (1, Bt)
        p = jnp.exp(scores_tb - m)                                             # (T, Bt)
        o_ref[...] = p / jnp.sum(p, axis=0, keepdims=True)
    else:
        # Softmax over T on the lane axis; store (Bt, T).
        s = scores_tb.T                                                        # (Bt, T)
        m = jnp.max(s, axis=-1, keepdims=True)                                 # (Bt, 1)
        p = jnp.exp(s - m)                                                     # (Bt, T)
        o_ref[...] = p / jnp.sum(p, axis=-1, keepdims=True)


def _round_up(x, m):
    return ((x + m - 1) // m) * m


def _tpu_generation_params():
    """(vmem_limit_bytes, num_tensorcores_per_chip) gated on the detected chip."""
    kind = ""
    try:
        kind = jax.devices()[0].device_kind.lower()
    except Exception:
        pass
    if ("v5" in kind) or ("v6" in kind):
        # 128 MiB physical VMEM, single TensorCore per chip.
        return 96 * 1024 * 1024, 1
    if "7" in kind:
        # v7x: 64 MiB physical VMEM per TC, 2 TensorCores per chip.
        return 48 * 1024 * 1024, 2
    # Unknown / other: stay within the default scoped-VMEM behaviour, assume 2 TCs.
    return 32 * 1024 * 1024, 2


def _choose_block_b(B, T, H, *, vmem_limit_bytes, num_tc):
    """Pick the batch block size Bt (multiple of 16).

    Budget counts the double-buffered bf16 encoder block AND the f32
    proj_e/energy intermediates (not just the inputs), so big blocks on
    v5e/v6e don't silently spill on v7x's smaller VMEM."""
    enc_db = 2 * T * H * 2          # double-buffered bf16 encoder block, per batch row
    interm = 2 * T * H * 4          # f32 proj_e + energy (single-buffered), per batch row
    hid_db = 2 * H * 4              # double-buffered f32 hidden, per batch row
    out_db = 2 * T * 4              # double-buffered f32 output, per batch row
    per_b = enc_db + interm + hid_db + out_db
    resident = 2 * 2 * H * H * 2 + 4 * H * 4   # weight halves (x2 buffers) + bias/v
    budget = int(0.75 * max(vmem_limit_bytes - resident, 0))
    bt_cap = max(16, (budget // per_b) // 16 * 16)

    b16 = _round_up(B, 16)
    bt = min(bt_cap, b16)
    if num_tc >= 2 and b16 >= 32:
        # Guarantee >= 2 grid steps so both v7x TensorCores get work.
        bt = min(bt, _round_up(max(b16 // 2, 16), 16))
    if T < 128 and bt >= 128:
        # Keep Bt a multiple of 128 so the (T, Bt) output layout is lane-dense.
        bt = (bt // 128) * 128
    return max(16, bt)


def attn_forward(hidden, encoder_outputs, weight, bias, v):
    """hidden: (1, B, H), encoder_outputs: (T, B, H) -> (B, 1, T)"""
    T, B, H = encoder_outputs.shape

    # Streams: encoder + weight halves in bf16 (dominant HBM traffic), small
    # operands stay f32.  Accumulation/tanh/softmax remain f32 in the kernel.
    hidden = hidden.astype(jnp.float32)
    enc = encoder_outputs.astype(jnp.bfloat16)
    wh_t = weight[:, :H].T.astype(jnp.bfloat16)      # (H, H)
    we_t = weight[:, H:].T.astype(jnp.bfloat16)      # (H, H)
    b2 = bias.reshape(1, H).astype(jnp.float32)
    v2 = v.reshape(1, H).astype(jnp.float32)

    vmem_limit, num_tc = _tpu_generation_params()
    Bt = _choose_block_b(B, T, H, vmem_limit_bytes=vmem_limit, num_tc=num_tc)

    # Pad the batch up to a multiple of Bt (padding rows dropped in the wrapper);
    # no "Bt divides B" constraint, so awkward batch sizes don't force tiny blocks.
    B_pad = Bt * ((B + Bt - 1) // Bt)
    if B_pad != B:
        hidden = jnp.pad(hidden, ((0, 0), (0, B_pad - B), (0, 0)))
        enc = jnp.pad(enc, ((0, 0), (0, B_pad - B), (0, 0)))

    grid = (B_pad // Bt,)

    # Lane-dense output layout when T is small and Bt is a 128-multiple.
    out_bt_lanes = (T < 128) and (Bt % 128 == 0)
    if out_bt_lanes:
        out_shape = jax.ShapeDtypeStruct((T, B_pad), jnp.float32)
        out_spec = pl.BlockSpec((T, Bt), lambda b: (0, b))
    else:
        out_shape = jax.ShapeDtypeStruct((B_pad, T), jnp.float32)
        out_spec = pl.BlockSpec((Bt, T), lambda b: (b, 0))

    out = pl.pallas_call(
        functools.partial(attn_kernel, out_bt_lanes=out_bt_lanes),
        out_shape=out_shape,
        grid_spec=pl.GridSpec(
            grid=grid,
            in_specs=[
                pl.BlockSpec((1, Bt, H), lambda b: (0, b, 0)),   # hidden  (native layout)
                pl.BlockSpec((T, Bt, H), lambda b: (0, b, 0)),   # encoder (native layout, bf16)
                pl.BlockSpec((H, H), lambda b: (0, 0)),          # Wh^T (VMEM-resident)
                pl.BlockSpec((H, H), lambda b: (0, 0)),          # We^T (VMEM-resident)
                pl.BlockSpec((1, H), lambda b: (0, 0)),          # bias (shared)
                pl.BlockSpec((1, H), lambda b: (0, 0)),          # v    (shared)
            ],
            out_specs=out_spec,
        ),
        compiler_params=pltpu.CompilerParams(
            dimension_semantics=("parallel",),        # batch axis shards across TCs on v7x
            vmem_limit_bytes=vmem_limit,
        ),
    )(hidden, enc, wh_t, we_t, b2, v2)

    # Layout plumbing only: drop batch padding, add the length-1 dim.
    if out_bt_lanes:
        return out[:, :B].T[:, None, :]               # (B, 1, T)
    return out[:B][:, None, :]                        # (B, 1, T)


def attn_reference(hidden, encoder_outputs, weight, bias, v):
    """Pure-JAX f32 reference mirroring the PyTorch forward exactly."""
    T, B, H = encoder_outputs.shape
    Hrep = jnp.transpose(jnp.tile(hidden, (T, 1, 1)), (1, 0, 2))        # (B, T, H)
    enc = jnp.transpose(encoder_outputs, (1, 0, 2))                     # (B, T, H)
    cat = jnp.concatenate([Hrep, enc], axis=2)                          # (B, T, 2H)
    energy = jnp.tanh(cat @ weight.T + bias)                            # (B, T, H)
    energy = jnp.transpose(energy, (0, 2, 1))                           # (B, H, T)
    vb = jnp.tile(v[None, None, :], (B, 1, 1))                          # (B, 1, H)
    scores = jnp.matmul(vb, energy)[:, 0, :]                            # (B, T)
    return jax.nn.softmax(scores, axis=1)[:, None, :]                   # (B, 1, T)


if __name__ == "__main__":
    B, T, H = 2, 8, 32

    key = jax.random.PRNGKey(0)
    k_hid, k_enc, k_w, k_b, k_v = jax.random.split(key, 5)

    # Inputs
    hidden = jax.random.normal(k_hid, (1, B, H), dtype=jnp.float32)
    encoder_outputs = jax.random.normal(k_enc, (T, B, H), dtype=jnp.float32)

    # Deterministic parameter init matching nn.Linear / module __init__ shapes.
    fan_in = 2 * H
    bound = 1.0 / math.sqrt(fan_in)
    weight = jax.random.uniform(k_w, (H, 2 * H), minval=-bound, maxval=bound,
                                dtype=jnp.float32)
    bias = jax.random.uniform(k_b, (H,), minval=-bound, maxval=bound,
                              dtype=jnp.float32)
    stdv = 1.0 / math.sqrt(H)
    v = stdv * jax.random.normal(k_v, (H,), dtype=jnp.float32)

    out = attn_forward(hidden, encoder_outputs, weight, bias, v)
    out = jax.block_until_ready(out)

    ref = attn_reference(hidden, encoder_outputs, weight, bias, v)
    assert out.shape == (B, 1, T), out.shape
    # Tolerance accommodates the bf16 encoder/weight streams (f32 accumulation).
    assert jnp.allclose(out, ref, atol=2e-2, rtol=2e-2), (out, ref)

    print("KERNEL_OK")
</pallas_src>

<mosaic_0001>
module attributes {stable_mosaic.version = 11 : i64} {
  func.func @attn_kernel(%arg0: i32, %arg1: memref<1x16x32xf32, #tpu.memory_space<vmem>>, %arg2: memref<8x16x32xbf16, #tpu.memory_space<vmem>>, %arg3: memref<32x32xbf16, #tpu.memory_space<vmem>>, %arg4: memref<32x32xbf16, #tpu.memory_space<vmem>>, %arg5: memref<1x32xf32, #tpu.memory_space<vmem>>, %arg6: memref<1x32xf32, #tpu.memory_space<vmem>>, %arg7: memref<16x8xf32, #tpu.memory_space<vmem>>) attributes {dimension_semantics = [#tpu.dimension_semantics<parallel>], iteration_bounds = array<i64: 1>, scalar_prefetch = 0 : i64, scratch_operands = 0 : i64, tpu.core_type = #tpu.core_type<tc>, window_params = [{transform_indices = @transform_0, window_bounds = array<i64: 1, 16, 32>}, {transform_indices = @transform_1, window_bounds = array<i64: 8, 16, 32>}, {pipeline_mode = #tpu.pipeline_mode<synchronous>, transform_indices = @transform_2, window_bounds = array<i64: 32, 32>}, {pipeline_mode = #tpu.pipeline_mode<synchronous>, transform_indices = @transform_3, window_bounds = array<i64: 32, 32>}, {pipeline_mode = #tpu.pipeline_mode<synchronous>, transform_indices = @transform_4, window_bounds = array<i64: 1, 32>}, {pipeline_mode = #tpu.pipeline_mode<synchronous>, transform_indices = @transform_5, window_bounds = array<i64: 1, 32>}, {transform_indices = @transform_6, window_bounds = array<i64: 16, 8>}]} {
    %c0 = arith.constant 0 : index
    %c0_0 = arith.constant 0 : index
    %c0_1 = arith.constant 0 : index
    %0 = vector.load %arg1[%c0, %c0_0, %c0_1] : memref<1x16x32xf32, #tpu.memory_space<vmem>>, vector<1x16x32xf32>
    %1 = vector.shape_cast %0 : vector<1x16x32xf32> to vector<16x32xf32>
    %2 = arith.truncf %1 : vector<16x32xf32> to vector<16x32xbf16>
    %c0_2 = arith.constant 0 : index
    %c0_3 = arith.constant 0 : index
    %c0_4 = arith.constant 0 : index
    %3 = vector.load %arg2[%c0_2, %c0_3, %c0_4] : memref<8x16x32xbf16, #tpu.memory_space<vmem>>, vector<8x16x32xbf16>
    %4 = vector.shape_cast %3 : vector<8x16x32xbf16> to vector<128x32xbf16>
    %c0_5 = arith.constant 0 : index
    %c0_6 = arith.constant 0 : index
    %5 = vector.load %arg3[%c0_5, %c0_6] : memref<32x32xbf16, #tpu.memory_space<vmem>>, vector<32x32xbf16>
    %cst = arith.constant dense<0.000000e+00> : vector<16x32xf32>
    %6 = tpu.matmul %2, %5, %cst {dimension_numbers = #tpu.dot_dimension_numbers<[1], [0], [0], [1], [0, 0, 1, 1], [], []>} : vector<16x32xbf16>, vector<32x32xbf16>, vector<16x32xf32> -> vector<16x32xf32>
    %c0_7 = arith.constant 0 : index
    %c0_8 = arith.constant 0 : index
    %7 = vector.load %arg4[%c0_7, %c0_8] : memref<32x32xbf16, #tpu.memory_space<vmem>>, vector<32x32xbf16>
    %cst_9 = arith.constant dense<0.000000e+00> : vector<128x32xf32>
    %8 = tpu.matmul %4, %7, %cst_9 {dimension_numbers = #tpu.dot_dimension_numbers<[1], [0], [0], [1], [0, 0, 1, 1], [], []>} : vector<128x32xbf16>, vector<32x32xbf16>, vector<128x32xf32> -> vector<128x32xf32>
    %c0_10 = arith.constant 0 : index
    %c0_11 = arith.constant 0 : index
    %9 = vector.load %arg5[%c0_10, %c0_11] : memref<1x32xf32, #tpu.memory_space<vmem>>, vector<1x32xf32>
    %10 = vector.broadcast %9 : vector<1x32xf32> to vector<16x32xf32>
    %11 = arith.addf %6, %10 : vector<16x32xf32>
    %12 = vector.shape_cast %8 : vector<128x32xf32> to vector<8x16x32xf32>
    %13 = vector.shape_cast %11 : vector<16x32xf32> to vector<1x16x32xf32>
    %14 = vector.broadcast %13 : vector<1x16x32xf32> to vector<8x16x32xf32>
    %15 = arith.addf %12, %14 : vector<8x16x32xf32>
    %16 = math.tanh %15 : vector<8x16x32xf32>
    %c0_12 = arith.constant 0 : index
    %c0_13 = arith.constant 0 : index
    %17 = vector.load %arg6[%c0_12, %c0_13] : memref<1x32xf32, #tpu.memory_space<vmem>>, vector<1x32xf32>
    %18 = vector.shape_cast %17 : vector<1x32xf32> to vector<1x1x32xf32>
    %19 = vector.broadcast %18 : vector<1x1x32xf32> to vector<8x16x32xf32>
    %20 = arith.mulf %16, %19 : vector<8x16x32xf32>
    %cst_14 = arith.constant dense<0.000000e+00> : vector<8x16xf32>
    %21 = vector.multi_reduction <add>, %20, %cst_14 [2] : vector<8x16x32xf32> to vector<8x16xf32>
    %22 = tpu.transpose %21, [1, 0] : vector<8x16xf32> -> vector<16x8xf32>
    %cst_15 = arith.constant dense<0xFF800000> : vector<16xf32>
    %23 = vector.multi_reduction <maximumf>, %22, %cst_15 [1] : vector<16x8xf32> to vector<16xf32>
    %24 = vector.shape_cast %23 : vector<16xf32> to vector<16x1xf32>
    %25 = vector.broadcast %24 : vector<16x1xf32> to vector<16x8xf32>
    %26 = arith.subf %22, %25 : vector<16x8xf32>
    %27 = math.exp %26 : vector<16x8xf32>
    %cst_16 = arith.constant dense<0.000000e+00> : vector<16xf32>
    %28 = vector.multi_reduction <add>, %27, %cst_16 [1] : vector<16x8xf32> to vector<16xf32>
    %29 = vector.shape_cast %28 : vector<16xf32> to vector<16x1xf32>
    %30 = vector.broadcast %29 : vector<16x1xf32> to vector<16x8xf32>
    %31 = arith.divf %27, %30 : vector<16x8xf32>
    %c0_17 = arith.constant 0 : index
    %c0_18 = arith.constant 0 : index
    %32 = vector.load %arg7[%c0_17, %c0_18] : memref<16x8xf32, #tpu.memory_space<vmem>>, vector<16x8xf32>
    tpu.vector_store %arg7[%c0_17, %c0_18], %31 {strides = array<i32>} : memref<16x8xf32, #tpu.memory_space<vmem>>, vector<16x8xf32>,
    return
  }
  func.func @transform_0(%arg0: i32) -> (i32, i32, i32) {
    %c0_i32 = arith.constant 0 : i32
    %c0_i32_0 = arith.constant 0 : i32
    %c0_i32_1 = arith.constant 0 : i32
    return %c0_i32, %arg0, %c0_i32_0 : i32, i32, i32
  }
  func.func @transform_1(%arg0: i32) -> (i32, i32, i32) {
    %c0_i32 = arith.constant 0 : i32
    %c0_i32_0 = arith.constant 0 : i32
    %c0_i32_1 = arith.constant 0 : i32
    return %c0_i32, %arg0, %c0_i32_0 : i32, i32, i32
  }
  func.func @transform_2(%arg0: i32) -> (i32, i32) {
    %c0_i32 = arith.constant 0 : i32
    %c0_i32_0 = arith.constant 0 : i32
    %c0_i32_1 = arith.constant 0 : i32
    return %c0_i32, %c0_i32_0 : i32, i32
  }
  func.func @transform_3(%arg0: i32) -> (i32, i32) {
    %c0_i32 = arith.constant 0 : i32
    %c0_i32_0 = arith.constant 0 : i32
    %c0_i32_1 = arith.constant 0 : i32
    return %c0_i32, %c0_i32_0 : i32, i32
  }
  func.func @transform_4(%arg0: i32) -> (i32, i32) {
    %c0_i32 = arith.constant 0 : i32
    %c0_i32_0 = arith.constant 0 : i32
    %c0_i32_1 = arith.constant 0 : i32
    return %c0_i32, %c0_i32_0 : i32, i32
  }
  func.func @transform_5(%arg0: i32) -> (i32, i32) {
    %c0_i32 = arith.constant 0 : i32
    %c0_i32_0 = arith.constant 0 : i32
    %c0_i32_1 = arith.constant 0 : i32
    return %c0_i32, %c0_i32_0 : i32, i32
  }
  func.func @transform_6(%arg0: i32) -> (i32, i32) {
    %c0_i32 = arith.constant 0 : i32
    %c0_i32_0 = arith.constant 0 : i32
    return %arg0, %c0_i32 : i32, i32
  }
}

</mosaic_0001>

<bundles_post_ra>
// kernel: tpu_custom_call.1
= control target key start
LH: loop header
LB: loop body
LE: loop exit
PB: predicated region body
PF: predicated region fallthrough
CT: control target
= control target key end

     0   :  { %11 = vsyncpa [#allocation3], 0  ;;  %s892_s0 = inlined_call_operand.hbm [shape: f32[1,16,32], index: 0, kind: input, shape index: {}]   ;;  %s893_s1 = inlined_call_operand.hbm [shape: bf16[8,16,32], index: 1, kind: input, shape index: {}]   ;;  %s894_s2 = inlined_call_operand.hbm [shape: bf16[32,32], index: 2, kind: input, shape index: {}]   ;;  %s895_s3 = inlined_call_operand.hbm [shape: bf16[32,32], index: 3, kind: input, shape index: {}]   ;;  %s896_s4 = inlined_call_operand.vmem [shape: f32[1,32], index: 4, kind: input, shape index: {}]   ;;  %s897_s5 = inlined_call_operand.vmem [shape: f32[1,32], index: 5, kind: input, shape index: {}]   ;;  %s898_s6 = inlined_call_operand.vmem [shape: f32[16,8], index: 6, kind: output, shape index: {}]  }
   0x1   :  { %12 = vsyncpa [#allocation5], 0  ;;  %s31_s23 = sshll.u32 %s893_s1, 4  ;;  %s32_s23 = int_to_ptr.hbm [resolvable:$true] %s31_s23 }
   0x2   :  { %13 = vsyncpa [#allocation8], 0  ;;  %s748_s24 = smov [#allocation4]   ;;  %s18_s28 = sshll.u32 %s892_s0, 4  ;;  %s19_s28 = int_to_ptr.hbm [resolvable:$true] %s18_s28 }
   0x3   :  { %s33_s25 = sshll.u32 %s748_s24, 4  ;;  %s749_s29 = smov 64   ;;  %s34_s25 = int_to_ptr.vmem [resolvable:$true] %s33_s25 }
   0x4   :  { %s750_s30 = smov 4   ;;  %s751_s7 = smov [#allocation2]  }
   0x5   :  { %39 = dma.hbm_to_vmem [thread:$0]  %s32_s23, 1024, %s34_s25, [#allocation5], %s749_s29, %s749_s29, %s750_s30  }
   0x6   :  { %s20_s8 = sshll.u32 %s751_s7, 4  ;;  %s752_s9 = smov 128   ;;  %s21_s8 = int_to_ptr.vmem [resolvable:$true] %s20_s8 }
   0x7   :  { %s753_s10 = smov 8   ;;  %s44_s12 = sshll.u32 %s894_s2, 4  ;;  %s45_s12 = int_to_ptr.hbm [resolvable:$true] %s44_s12 }
   0x8   :  { %26 = dma.hbm_to_vmem [thread:$0]  %s19_s28, 256, %s21_s8, [#allocation3], %s752_s9, %s752_s9, %s753_s10  }
   0x9   :  { %s754_s13 = smov [#allocation6]   ;;  %s57_s16 = sshll.u32 %s895_s3, 4  ;;  %s58_s16 = int_to_ptr.hbm [resolvable:$true] %s57_s16 }
   0xa   :  { %s46_s14 = sshll.u32 %s754_s13, 4  ;;  %s755_s17 = smov [#allocation7]   ;;  %s47_s14 = int_to_ptr.vmem [resolvable:$true] %s46_s14 }
   0xb   :  { %52 = dma.hbm_to_vmem [thread:$0]  %s45_s12, 256, %s47_s14, [#allocation5], %s749_s29, %s749_s29, %s750_s30  }
   0xc   :  { %s59_s18 = sshll.u32 %s755_s17, 4  ;;  %s60_s18 = int_to_ptr.vmem [resolvable:$true] %s59_s18 }
   0xd   :  { %65 = dma.hbm_to_vmem [thread:$0]  %s58_s16, 256, %s60_s18, [#allocation8], %s749_s29, %s749_s29, %s750_s30  }
   0xe   :  { %742 = dma.done.wait [#allocation3], 256  }
   0xf   :  { %743 = vsyncadd [#allocation3], 4294967040 }
  0x10   :  { %744 = dma.done.wait [#allocation5], 1280  }
  0x11   :  { %745 = vsyncadd [#allocation5], 4294966016 }
  0x12   :  { %746 = dma.done.wait [#allocation8], 256  }
  0x13   :  { %747 = vsyncadd [#allocation8], 4294967040  ;;  %v590_v0 = vld [vmem:[#allocation7 + $0x8] sm:$0xff]  ;;  %v588_v1 = vld [vmem:[#allocation6 + $0x8] sm:$0xff]  ;;  %vm166_vm0 = vcmask 261120   ;;  %vm394_vm1 = vcmask 130112  }
  0x14   :  { %197 = vmatpush.bf16.msra.mxu0 %v590_v0  ;;  %591 = vmatpush.bf16.msra.mxu2 %v590_v0  ;;  %v589_v2 = vld [vmem:[#allocation7] sm:$0xff]  ;;  %v587_v3 = vld [vmem:[#allocation6] sm:$0xff]  ;;  %v88_v5 = vld [vmem:[#allocation2 + $0x8] sm:$0xff]  ;;  %vm417_vm2 = vcmask 1041409   ;;  %vm419_vm3 = vcmask 1042434   ;;  %vm421_vm4 = vcmask 1043459  }
  0x15   :  { %592 = vmatpush.bf16.msra.mxu3 %v590_v0  ;;  %265 = vmatpush.bf16.msra.mxu1 %v588_v1  ;;  %v87_v4 = vld [vmem:[#allocation2] sm:$0xff]  ;;  %v579_v6 = vld [vmem:[#allocation4] sm:$0xff]  ;;  %v582_v7 = vld [vmem:[#allocation4 + $0x18] sm:$0xff]  ;;  %vm423_vm5 = vcmask 1044484   ;;  %vm425_vm6 = vcmask 1045509   ;;  %vm427_vm7 = vcmask 1046534  }
  0x16   :  { %v585_v8 = vld [vmem:[#allocation4 + $0x30] sm:$0xff]  ;;  %v89_v9 = vpack.c.bf16 %v88_v5, %v87_v4  ;;  %v580_v10 = vld [vmem:[#allocation4 + $0x8] sm:$0xff]  ;;  %v583_v11 = vld [vmem:[#allocation4 + $0x20] sm:$0xff]  ;;  %vm429_vm8 = vcmask 1047559   ;;  %vm464_vm9 = vcmask 64512  }
  0x17   :  { %v586_v12 = vld [vmem:[#allocation4 + $0x38] sm:$0xff]  ;;  %v581_v13 = vld [vmem:[#allocation4 + $0x10] sm:$0xff]  ;;  %v584_v14 = vld [vmem:[#allocation4 + $0x28] sm:$0xff] }
  0x18   :  { %198 = vmatpush.bf16.msra.mxu0 %v589_v2  ;;  %593 = vmatpush.bf16.msra.mxu2 %v589_v2  ;;  %v604_v15 = vld [vmem:[%s896_s4] ss:$0 sm:$0xff] }
  0x19   :  { %594 = vmatpush.bf16.msra.mxu3 %v589_v2  ;;  %266 = vmatpush.bf16.msra.mxu1 %v587_v3  ;;  %v822_v24 = vld [vmem:[%s897_s5] ss:$0 sm:$0xff] }
  0x1b   :  { %562 = vmatmul.msk.bf16.vlgmr.msra.gmra.mxu0 %vm166_vm0, %v579_v6  ;;  %565 = vmatmul.msk.bf16.vlgmr.msra.gmra.mxu2 %vm166_vm0, %v582_v7 }
  0x1c   :  { %568 = vmatmul.msk.bf16.vlgmr.msra.gmra.mxu3 %vm166_vm0, %v585_v8  ;;  %578 = vmatmul.msk.bf16.vlgmr.msra.gmra.mxu1 %vm166_vm0, %v89_v9 }
  0x2b   :  { %563 = vmatmul.msk.bf16.gmra.mxu0 %vm166_vm0, %v580_v10  ;;  %566 = vmatmul.msk.bf16.gmra.mxu2 %vm166_vm0, %v583_v11 }
  0x2c   :  { %569 = vmatmul.msk.bf16.gmra.mxu3 %vm166_vm0, %v586_v12 }
  0x3b   :  { %564 = vmatmul.msk.bf16.gmra.mxu0 %vm166_vm0, %v581_v13  ;;  %567 = vmatmul.msk.bf16.gmra.mxu2 %vm166_vm0, %v584_v14 }
  0x98   :  { %v200_v16 = vpop.f32.mrf.mxu0 }
  0x99   :  { %v268_v17 = vpop.f32.mrf.mxu1 }
  0x9a   :  { %v815_v18 = vadd.f32 %v604_v15, %v268_v17 }
  0x9c   :  { %v273_v19 = vadd.f32 %v815_v18, %v200_v16 }
  0x9e   :  { %v215_v20 = vpop.f32.mrf.mxu2  ;;  %606 = vtanh.f32 %v273_v19 }
  0x9f   :  { %v279_v21 = vadd.f32 %v815_v18, %v215_v20  ;;  %v230_v22 = vpop.f32.mrf.mxu3 }
  0xa0   :  { %v202_v23 = vpop.f32.mrf.mxu0  ;;  %v285_v29 = vadd.f32 %v815_v18, %v230_v22 }
  0xa1   :  { %608 = vtanh.f32 %v279_v21  ;;  %v270_v25 = vpop.f32.mrf.mxu1 }
  0xa2   :  { %v824_v27 = vadd.f32 %v604_v15, %v270_v25 }
  0xa4   :  { %v607_v26 = vpop.eup %606  ;;  %v274_v39 = vadd.f32 %v824_v27, %v202_v23 }
  0xa5   :  { %v309_v28 = vmul.f32 %v607_v26, %v822_v24 }
  0xa6   :  { %v217_v30 = vpop.f32.mrf.mxu2 }
  0xa7   :  { %v280_v31 = vadd.f32 %v824_v27, %v217_v30  ;;  %v232_v32 = vpop.f32.mrf.mxu3  ;;  %v325_v33 = vsel %vm166_vm0, %v309_v28, 0.0  ;;  %v609_v34 = vpop.eup %608 }
  0xa8   :  { %326 = vadd.xlane.f32.xlu0 %v325_v33  ;;  %v205_v35 = vpop.f32.mrf.mxu0  ;;  %v286_v36 = vadd.f32 %v824_v27, %v232_v32  ;;  %v315_v37 = vmul.f32 %v609_v34, %v822_v24 }
  0xa9   :  { %610 = vtanh.f32 %v280_v31  ;;  %v275_v46 = vadd.f32 %v815_v18, %v205_v35 }
  0xaa   :  { %612 = vtanh.f32 %v285_v29  ;;  %v343_v42 = vsel %vm166_vm0, %v315_v37, 0.0 }
  0xab   :  { %614 = vtanh.f32 %v286_v36 }
  0xae   :  { %v220_v38 = vpop.f32.mrf.mxu2 }
  0xaf   :  { %v611_v40 = vpop.eup %610  ;;  %v281_v41 = vadd.f32 %v815_v18, %v220_v38  ;;  %v235_v47 = vpop.f32.mrf.mxu3 }
  0xb0   :  { %v613_v43 = vpop.eup %612  ;;  %344 = vadd.xlane.f32.xlu0 %v343_v42  ;;  %v207_v44 = vpop.f32.mrf.mxu0  ;;  %v316_v45 = vmul.f32 %v611_v40, %v822_v24  ;;  %v287_v28 = vadd.f32 %v815_v18, %v235_v47 }
  0xb1   :  { %616 = vtanh.f32 %v281_v41  ;;  %v615_v49 = vpop.eup %614  ;;  %v321_v50 = vmul.f32 %v613_v43, %v822_v24  ;;  %v276_v59 = vadd.f32 %v824_v27, %v207_v44 }
  0xb2   :  { %v346_v48 = vsel %vm166_vm0, %v316_v45, 0.0  ;;  %618 = vtanh.f32 %v274_v39  ;;  %v322_v52 = vmul.f32 %v615_v49, %v822_v24  ;;  %v389_v45 = vlaneseq }
  0xb3   :  { %347 = vadd.xlane.f32.xlu1 %v346_v48  ;;  %620 = vtanh.f32 %v275_v46  ;;  %v361_v55 = vsel %vm166_vm0, %v321_v50, 0.0 }
  0xb4   :  { %v364_v61 = vsel %vm166_vm0, %v322_v52, 0.0  ;;  %v390_v48 = vand.u32 127, %v389_v45 }
  0xb6   :  { %v222_v51 = vpop.f32.mrf.mxu2  ;;  %v392_v49 = vadd.s32 4294967288, %v390_v48 }
  0xb7   :  { %v617_v53 = vpop.eup %616  ;;  %v282_v54 = vadd.f32 %v824_v27, %v222_v51  ;;  %v237_v0 = vpop.f32.mrf.mxu3 }
  0xb8   :  { %v619_v56 = vpop.eup %618  ;;  %362 = vadd.xlane.f32.xlu0 %v361_v55  ;;  %v210_v57 = vpop.f32.mrf.mxu0  ;;  %v317_v58 = vmul.f32 %v617_v53, %v822_v24  ;;  %v288_v2 = vadd.f32 %v824_v27, %v237_v0 }
  0xb9   :  { %v277_v60 = vadd.f32 %v815_v18, %v210_v57  ;;  %622 = vtanh.f32 %v282_v54  ;;  %v621_v63 = vpop.eup %620  ;;  %v310_v1 = vmul.f32 %v619_v56, %v822_v24 }
  0xba   :  { %v349_v62 = vsel %vm166_vm0, %v317_v58, 0.0  ;;  %v311_v4 = vmul.f32 %v621_v63, %v822_v24 }
  0xbb   :  { %624 = vtanh.f32 %v277_v60  ;;  %365 = vadd.xlane.f32.xlu1 %v364_v61  ;;  %350 = vadd.xlane.f32.xlu2 %v349_v62  ;;  %v328_v5 = vsel %vm166_vm0, %v310_v1, 0.0 }
  0xbc   :  { %626 = vtanh.f32 %v276_v59  ;;  %v331_v11 = vsel %vm166_vm0, %v311_v4, 0.0 }
  0xbd   :  { %628 = vtanh.f32 %v288_v2 }
  0xbe   :  { %v225_v3 = vpop.f32.mrf.mxu2 }
  0xbf   :  { %v623_v6 = vpop.eup %622  ;;  %v283_v9 = vadd.f32 %v815_v18, %v225_v3 }
  0xc0   :  { %329 = vadd.xlane.f32.xlu0 %v328_v5  ;;  %v212_v7 = vpop.f32.mrf.mxu0  ;;  %v318_v14 = vmul.f32 %v623_v6, %v822_v24 }
  0xc1   :  { %v625_v8 = vpop.eup %624  ;;  %v278_v10 = vadd.f32 %v824_v27, %v212_v7 }
  0xc2   :  { %v313_v12 = vmul.f32 %v625_v8, %v822_v24  ;;  %v627_v13 = vpop.eup %626  ;;  %v352_v20 = vsel %vm166_vm0, %v318_v14, 0.0 }
  0xc3   :  { %630 = vtanh.f32 %v278_v10  ;;  %332 = vadd.xlane.f32.xlu1 %v331_v11  ;;  %v312_v17 = vmul.f32 %v627_v13, %v822_v24  ;;  %v629_v21 = vpop.eup %628 }
  0xc4   :  { %v337_v15 = vsel %vm166_vm0, %v313_v12, 0.0  ;;  %632 = vtanh.f32 %v283_v9  ;;  %v324_v29 = vmul.f32 %v629_v21, %v822_v24 }
  0xc5   :  { %338 = vadd.xlane.f32.xlu2 %v337_v15  ;;  %v334_v23 = vsel %vm166_vm0, %v312_v17, 0.0 }
  0xc6   :  { %v227_v16 = vpop.f32.mrf.mxu2  ;;  %v370_v32 = vsel %vm166_vm0, %v324_v29, 0.0 }
  0xc7   :  { %v284_v19 = vadd.f32 %v824_v27, %v227_v16 }
  0xc8   :  { %353 = vadd.xlane.f32.xlu0 %v352_v20 }
  0xc9   :  { %v631_v22 = vpop.eup %630  ;;  %634 = vtanh.f32 %v284_v19 }
  0xca   :  { %v314_v25 = vmul.f32 %v631_v22, %v822_v24  ;;  %v633_v26 = vpop.eup %632  ;;  %636 = vtanh.f32 %v287_v28 }
  0xcb   :  { %335 = vadd.xlane.f32.xlu1 %v334_v23  ;;  %v319_v27 = vmul.f32 %v633_v26, %v822_v24 }
  0xcc   :  { %v340_v30 = vsel %vm166_vm0, %v314_v25, 0.0 }
  0xcd   :  { %341 = vadd.xlane.f32.xlu2 %v340_v30  ;;  %v355_v34 = vsel %vm166_vm0, %v319_v27, 0.0 }
  0xcf   :  { %v635_v31 = vpop.eup %634 }
  0xd0   :  { %371 = vadd.xlane.f32.xlu0 %v370_v32  ;;  %v320_v33 = vmul.f32 %v635_v31, %v822_v24  ;;  %v637_v35 = vpop.eup %636 }
  0xd1   :  { %v323_v36 = vmul.f32 %v637_v35, %v822_v24 }
  0xd2   :  { %v358_v18 = vsel %vm166_vm0, %v320_v33, 0.0 }
  0xd3   :  { %356 = vadd.xlane.f32.xlu1 %v355_v34  ;;  %v367_v37 = vsel %vm166_vm0, %v323_v36, 0.0 }
  0xd5   :  { %359 = vadd.xlane.f32.xlu2 %v358_v18 }
  0xdd   :  { %368 = vadd.xlane.f32.xlu2 %v367_v37 }
 0x11b   :  { %v327_v38 = vpop.xlane.xlu0 %326 }
 0x11c   :  { %v391_v55 = vperm.slane %v327_v38, %v390_v48 }
 0x123   :  { %v345_v39 = vpop.xlane.xlu0 %344 }
 0x124   :  { %v402_v1 = vperm.slane %v345_v39, %v390_v48 }
 0x126   :  { %v348_v40 = vpop.xlane.xlu1 %347 }
 0x127   :  { %v403_v62 = vperm.slane %v348_v40, %v392_v49 }
 0x129   :  { %v404_v5 = vsel %vm394_vm1, %v403_v62, %v402_v1 }
 0x12b   :  { %v363_v42 = vpop.xlane.xlu0 %362 }
 0x12c   :  { %v411_v14 = vperm.slane %v363_v42, %v390_v48 }
 0x12e   :  { %v366_v41 = vpop.xlane.xlu1 %365  ;;  %v351_v43 = vpop.xlane.xlu2 %350 }
 0x12f   :  { %v405_v7 = vperm.slane %v351_v43, %v390_v48  ;;  %v412_v10 = vperm.slane %v366_v41, %v392_v49 }
 0x131   :  { %v413_v20 = vsel %vm394_vm1, %v412_v10, %v411_v14 }
 0x133   :  { %v330_v47 = vpop.xlane.xlu0 %329 }
 0x134   :  { %v393_v53 = vperm.slane %v330_v47, %v392_v49 }
 0x136   :  { %v333_v44 = vpop.xlane.xlu1 %332  ;;  %v395_v59 = vsel %vm394_vm1, %v393_v53, %v391_v55 }
 0x137   :  { %v396_v24 = vperm.slane %v333_v44, %v390_v48 }
 0x138   :  { %v339_v46 = vpop.xlane.xlu2 %338 }
 0x139   :  { %v399_v57 = vperm.slane %v339_v46, %v390_v48 }
 0x13b   :  { %v354_v58 = vpop.xlane.xlu0 %353 }
 0x13c   :  { %v406_v4 = vperm.slane %v354_v58, %v392_v49 }
 0x13e   :  { %v336_v50 = vpop.xlane.xlu1 %335  ;;  %v407_v11 = vsel %vm394_vm1, %v406_v4, %v405_v7 }
 0x13f   :  { %v397_v51 = vperm.slane %v336_v50, %v392_v49 }
 0x140   :  { %v342_v52 = vpop.xlane.xlu2 %341 }
 0x141   :  { %v400_v54 = vperm.slane %v342_v52, %v392_v49  ;;  %v398_v56 = vsel %vm394_vm1, %v397_v51, %v396_v24 }
 0x142   :  { %v418_v60 = vsel %vm417_vm2, %v398_v56, %v395_v59 }
 0x143   :  { %v401_v61 = vsel %vm394_vm1, %v400_v54, %v399_v57  ;;  %v372_v12 = vpop.xlane.xlu0 %371 }
 0x144   :  { %v420_v2 = vsel %vm419_vm3, %v401_v61, %v418_v60  ;;  %v415_v17 = vperm.slane %v372_v12, %v392_v49 }
 0x145   :  { %v422_v8 = vsel %vm421_vm4, %v404_v5, %v420_v2 }
 0x146   :  { %v357_v63 = vpop.xlane.xlu1 %356  ;;  %v424_v13 = vsel %vm423_vm5, %v407_v11, %v422_v8 }
 0x147   :  { %v408_v6 = vperm.slane %v357_v63, %v390_v48 }
 0x148   :  { %v360_v0 = vpop.xlane.xlu2 %359 }
 0x149   :  { %v409_v3 = vperm.slane %v360_v0, %v392_v49 }
 0x14b   :  { %v410_v9 = vsel %vm394_vm1, %v409_v3, %v408_v6 }
 0x14c   :  { %v426_v16 = vsel %vm425_vm6, %v410_v9, %v424_v13 }
 0x14d   :  { %v428_v22 = vsel %vm427_vm7, %v413_v20, %v426_v16 }
 0x150   :  { %v369_v15 = vpop.xlane.xlu2 %368 }
 0x151   :  { %v414_v19 = vperm.slane %v369_v15, %v390_v48 }
 0x153   :  { %v416_v21 = vsel %vm394_vm1, %v415_v17, %v414_v19 }
 0x154   :  { %v430_v23 = vsel %vm429_vm8, %v416_v21, %v428_v22 }
 0x155   :  { %432 = vxpose.xlu1.b32.start.end [1/1] (short) (narrow) %v430_v23, 16 }
 0x1f9   :  { %v448_v25 = vpop.trf.xlu1 }
 0x1fa   :  { %v465_v26 = vsel %vm464_vm9, %v448_v25, -inf }
 0x1fb   :  { %466 = vmax.xlane.f32.xlu2 %v465_v26 }
 0x201   :  { %v449_v28 = vpop.trf.xlu1 }
 0x202   :  { %v468_v29 = vsel %vm464_vm9, %v449_v28, -inf }
 0x203   :  { %469 = vmax.xlane.f32.xlu0 %v468_v29 }
 0x26e   :  { %v467_v30 = vpop.xlane.xlu2 %466 }
 0x26f   :  { %v471_v27 = vsub.f32 %v448_v25, %v467_v30 }
 0x271   :  { %v473_v31 = vmul.f32 1.442695, %v471_v27 }
 0x273   :  { %638 = vpow2.f32 %v473_v31 }
 0x276   :  { %v470_v32 = vpop.xlane.xlu0 %469 }
 0x277   :  { %v472_v33 = vsub.f32 %v449_v28, %v470_v32 }
 0x279   :  { %v639_v34 = vpop.eup %638  ;;  %v475_v18 = vmul.f32 1.442695, %v472_v33 }
 0x27a   :  { %v477_v35 = vsel %vm464_vm9, %v639_v34, 0.0 }
 0x27b   :  { %640 = vpow2.f32 %v475_v18  ;;  %478 = vadd.xlane.f32.xlu2 %v477_v35 }
 0x281   :  { %v641_v36 = vpop.eup %640 }
 0x282   :  { %v480_v37 = vsel %vm464_vm9, %v641_v36, 0.0 }
 0x283   :  { %481 = vadd.xlane.f32.xlu0 %v480_v37 }
 0x2ee   :  { %v479_v38 = vpop.xlane.xlu2 %478 }
 0x2ef   :  { %642 = vrcp.f32 %v479_v38  ;;  %v494_v43 = vand.u32 2147483648, %v479_v38  ;;  %v492_v45 = vand.u32 2147483647, %v479_v38  ;;  %vm488_vm11 = vweird.f32 %v479_v38 }
 0x2f1   :  { %v495_v48 = vor.u32 1.1754944e-38, %v494_v43  ;;  %vm493_vm13 = vcmp.eq.f32.partialorder %v492_v45, 8.507059e+37 }
 0x2f5   :  { %v643_v39 = vpop.eup %642 }
 0x2f6   :  { %v484_v40 = vmul.f32 %v643_v39, %v479_v38  ;;  %v482_v41 = vpop.xlane.xlu0 %481  ;;  %vm489_vm10 = vweird.f32 %v643_v39 }
 0x2f7   :  { %644 = vrcp.f32 %v482_v41  ;;  %vm490_vm12 = vmor %vm488_vm11, %vm489_vm10  ;;  %v509_v24 = vand.u32 2147483648, %v482_v41  ;;  %v507_v55 = vand.u32 2147483647, %v482_v41  ;;  %vm503_vm15 = vweird.f32 %v482_v41 }
 0x2f8   :  { %v485_v42 = vsub.f32 1.0, %v484_v40 }
 0x2f9   :  { %v510_v57 = vor.u32 1.1754944e-38, %v509_v24  ;;  %vm508_vm1 = vcmp.eq.f32.partialorder %v507_v55, 8.507059e+37 }
 0x2fa   :  { %v486_v44 = vmul.f32 %v643_v39, %v485_v42 }
 0x2fc   :  { %v487_v46 = vadd.f32 %v643_v39, %v486_v44 }
 0x2fd   :  { %v645_v47 = vpop.eup %644 }
 0x2fe   :  { %v491_v49 = vsel %vm490_vm12, %v643_v39, %v487_v46  ;;  %v499_v50 = vmul.f32 %v645_v47, %v482_v41  ;;  %vm504_vm14 = vweird.f32 %v645_v47 }
 0x2ff   :  { %v496_v51 = vsel %vm493_vm13, %v495_v48, %v491_v49  ;;  %vm505_vm0 = vmor %vm503_vm15, %vm504_vm14 }
 0x300   :  { %v497_v52 = vmul.f32 %v639_v34, %v496_v51  ;;  %v500_v53 = vsub.f32 1.0, %v499_v50 }
 0x302   :  { %513 = vst.msk [vmem:[%s898_s6] sm:$0xff] %vm464_vm9, %v497_v52  ;;  %v501_v54 = vmul.f32 %v645_v47, %v500_v53 }
 0x304   :  { %v502_v56 = vadd.f32 %v645_v47, %v501_v54 }
 0x306   :  { %v506_v58 = vsel %vm505_vm0, %v645_v47, %v502_v56 }
 0x307   :  { %v511_v59 = vsel %vm508_vm1, %v510_v57, %v506_v58 }
 0x308   :  { %v512_v60 = vmul.f32 %v641_v36, %v511_v59 }
 0x30a   :  { %514 = vst.msk [vmem:[%s898_s6 + $0x8] sm:$0xff] %vm464_vm9, %v512_v60 }
 0x30b   :  { %519 = vsyncpa [#allocation3], 1 }
 0x30c   :  { %520 = vsyncpa [#allocation5], 1 }
 0x30d   :  { %521 = vsyncpa [#allocation8], 1 }

</bundles_post_ra>
